<compile_context>
chip_gen: v5e
topology: v5e:2x2
jax: 0.10.0
libtpu: 0.0.40
codegen_flags: <defaults>
</compile_context>

<pallas_src>
import jax
import jax.numpy as jnp
from jax.experimental import pallas as pl
from jax.experimental.pallas import tpu as pltpu


def _round_up(x, m):
    return (x + m - 1) // m * m


def _vmem_budget_bytes():
    # Generation-aware VMEM budget for sizing the position tile.
    # v5e/v6e: 128 MiB physical (16/32 MiB scoped default), v7x: 64 MiB.
    try:
        cap = pltpu.get_tpu_info().vmem_capacity_bytes
    except Exception:
        cap = 64 * 1024 * 1024  # most conservative (v7x)
    return min(cap // 3, 20 * 1024 * 1024)


# ----------------------------- Pallas kernel ------------------------------
def _mlp_kernel(p_ref, w1_ref, b1_ref, w2_ref, b2_ref, w3_ref, b3_ref, o_ref):
    # p_ref : (F, tp)        bf16 patch features, channel-major (F = C_in*4)
    # w1    : (H, F) bf16    b1: (H, 1) f32
    # w2    : (H, H) bf16    b2: (H, 1) f32
    # w3    : (num_out, H) bf16   b3: (num_out, 1) f32
    # o_ref : (num_out, tp)  bf16 -- lane-dense along tp
    p = p_ref[...]                                               # (F, tp) bf16

    h = jnp.dot(w1_ref[...], p, preferred_element_type=jnp.float32)
    h = jnp.maximum(h + b1_ref[...], 0.0)                        # f32 ReLU

    h = jnp.dot(w2_ref[...], h.astype(jnp.bfloat16),
                preferred_element_type=jnp.float32)
    h = jnp.maximum(h + b2_ref[...], 0.0)                        # f32 ReLU

    # Note: if profiling ever shows the vmatmul slot binding, this tiny
    # (num_out x H) matmul can move to the VPU epilogue; at current sizes the
    # kernel is HBM-bound so it stays on the MXU.
    o = jnp.dot(w3_ref[...], h.astype(jnp.bfloat16),
                preferred_element_type=jnp.float32)
    o_ref[...] = (o + b3_ref[...]).astype(o_ref.dtype)


def _run_mlp(pT, w1, b1, w2, b2, w3, b3, *, tp, out_dtype):
    # pT: (F, NP_pad) bf16 channel-major patches, NP_pad % tp == 0, tp % 128 == 0.
    F, NP_pad = pT.shape
    Hh = w1.shape[0]
    num_out = w3.shape[0]
    assert NP_pad % tp == 0 and tp % 128 == 0

    const = lambda j: (0, 0)
    flops = 2 * NP_pad * (Hh * F + Hh * Hh + num_out * Hh)
    out_itemsize = jnp.dtype(out_dtype).itemsize
    bytes_accessed = (NP_pad * F * pT.dtype.itemsize
                      + NP_pad * num_out * out_itemsize
                      + int(w1.size + w2.size + w3.size) * 2
                      + int(b1.size + b2.size + b3.size) * 4)

    return pl.pallas_call(
        _mlp_kernel,
        out_shape=jax.ShapeDtypeStruct((num_out, NP_pad), out_dtype),
        grid=(NP_pad // tp,),
        in_specs=[
            pl.BlockSpec((F, tp), lambda j: (0, j)),    # patch stream
            pl.BlockSpec((Hh, F), const),               # W1
            pl.BlockSpec((Hh, 1), const),               # b1
            pl.BlockSpec((Hh, Hh), const),              # W2
            pl.BlockSpec((Hh, 1), const),               # b2
            pl.BlockSpec((num_out, Hh), const),         # W3
            pl.BlockSpec((num_out, 1), const),          # b3
        ],
        out_specs=pl.BlockSpec((num_out, tp), lambda j: (0, j)),
        compiler_params=pltpu.CompilerParams(
            dimension_semantics=("parallel",),
            vmem_limit_bytes=32 * 1024 * 1024),
        cost_estimate=pl.CostEstimate(
            flops=flops, transcendentals=0, bytes_accessed=bytes_accessed),
    )(pT, w1, b1, w2, b2, w3, b3)


# ----------------------------- Module wrapper ------------------------------
class FullyConnectedPallas:
    """is_B_net=False, non_lin='ReLU', nb_hidden_layers=2.

    Output is bf16 (kernel writeback is bf16 to halve output HBM traffic;
    accuracy is already bounded by the bf16 MXU operands)."""

    OUT_DTYPE = jnp.bfloat16

    def __init__(self, num_in, num_out, hidden_layer_size, key):
        self.num_in = num_in
        self.num_out = num_out
        self.hidden = hidden_layer_size

        k = jax.random.split(key, 6)
        # Deterministic synthetic params in PyTorch Conv2d shapes, mapped to
        # the channel-major kernel layout. MXU operands are bf16; biases (and
        # all accumulation) stay f32.
        # init_conv_2x2: (hidden, num_in, 2, 2) -> W1 (hidden, num_in*4)
        w_conv = jax.random.normal(k[0], (hidden_layer_size, num_in, 2, 2),
                                   jnp.float32) * 0.1
        self.w1 = w_conv.reshape(hidden_layer_size, num_in * 4).astype(jnp.bfloat16)
        self.b1 = (jax.random.normal(k[1], (hidden_layer_size,),
                                     jnp.float32) * 0.1).reshape(-1, 1)
        # hidden 1x1 conv: (hidden, hidden, 1, 1) -> W2 (out, in)
        self.w2 = (jax.random.normal(k[2], (hidden_layer_size, hidden_layer_size),
                                     jnp.float32) * 0.1).astype(jnp.bfloat16)
        self.b2 = (jax.random.normal(k[3], (hidden_layer_size,),
                                     jnp.float32) * 0.1).reshape(-1, 1)
        # output 1x1 conv: (num_out, hidden, 1, 1) -> W3 (out, in)
        self.w3 = (jax.random.normal(k[4], (num_out, hidden_layer_size),
                                     jnp.float32) * 0.1).astype(jnp.bfloat16)
        self.b3 = (jax.random.normal(k[5], (num_out,),
                                     jnp.float32) * 0.1).reshape(-1, 1)

    @staticmethod
    def _space_to_depth_T(x):
        # NCHW (N,C,H,W) -> channel-major patch matrix (C*4, N*Ho*Wo) in bf16.
        # Feature index = c*4 + kh*2 + kw, matching W1 = conv_w.reshape(H, C*4);
        # position index = n*Ho*Wo + i*Wo + j (batch flattened into positions).
        # Cast to bf16 BEFORE the relayout so the XLA transpose moves half the
        # bytes of the f32 variant.
        N, C, H, W = x.shape
        Ho, Wo = H // 2, W // 2
        xb = x.astype(jnp.bfloat16)
        p = xb.reshape(N, C, Ho, 2, Wo, 2).transpose(1, 3, 5, 0, 2, 4)
        return p.reshape(C * 4, N * Ho * Wo)

    def _choose_tp(self, NP):
        # Per-position VMEM bytes in one grid step: double-buffered bf16 input
        # + double-buffered bf16 output + f32 h/h2 intermediates + their bf16
        # casts.  Weights are tiny and ignored.
        F = self.num_in * 4
        Hh = self.hidden
        bytes_per_pos = (2 * F * 2 + 2 * self.num_out * 2
                         + 2 * Hh * 4 + 2 * Hh * 2)
        budget = _vmem_budget_bytes()
        tp_max = max(128, (budget // bytes_per_pos) // 128 * 128)
        tp_max = min(tp_max, 16384)
        # Aim for >=4 grid steps (pipeline overlap, v7x core sharding) while
        # keeping tiles lane-dense: multiple of 128, ideally >=512 lanes.
        tp = _round_up(pl.cdiv(NP, 4), 128)
        tp = max(tp, min(512, _round_up(NP, 128)))
        return min(tp, tp_max)

    def __call__(self, x):
        # x: NCHW (N, C_in, H, W), H, W even.
        N, C, H, W = x.shape
        assert C == self.num_in and H % 2 == 0 and W % 2 == 0
        Ho, Wo = H // 2, W // 2
        NP = N * Ho * Wo

        pT = self._space_to_depth_T(x)                     # (F, N*P) bf16

        tp = self._choose_tp(NP)
        NP_pad = _round_up(NP, tp)                         # always %128 == 0
        if NP_pad != NP:
            pT = jnp.pad(pT, ((0, 0), (0, NP_pad - NP)))

        out = _run_mlp(pT, self.w1, self.b1, self.w2, self.b2,
                       self.w3, self.b3, tp=tp,
                       out_dtype=self.OUT_DTYPE)           # (num_out, NP_pad)
        out = out[:, :NP].reshape(self.num_out, N, Ho, Wo)
        return out.transpose(1, 0, 2, 3)                   # NCHW, bf16


# Pure-JAX reference for verification (same math/dtypes, no Pallas).
def _reference(model, x):
    N, C, H, W = x.shape
    Ho, Wo = H // 2, W // 2
    pT = FullyConnectedPallas._space_to_depth_T(x)         # (F, N*P) bf16
    h = jnp.dot(model.w1, pT, preferred_element_type=jnp.float32)
    h = jnp.maximum(h + model.b1, 0.0)
    h = jnp.dot(model.w2, h.astype(jnp.bfloat16),
                preferred_element_type=jnp.float32)
    h = jnp.maximum(h + model.b2, 0.0)
    o = jnp.dot(model.w3, h.astype(jnp.bfloat16),
                preferred_element_type=jnp.float32)
    o = (o + model.b3).astype(model.OUT_DTYPE)
    return o.reshape(model.num_out, N, Ho, Wo).transpose(1, 0, 2, 3)


if __name__ == "__main__":
    key = jax.random.PRNGKey(0)
    kx, kp = jax.random.split(key)

    # Small shapes: batch=2, channels=4, spatial=16x16, hidden=32, num_out=3.
    x = jax.random.normal(kx, (2, 4, 16, 16), jnp.float32)

    model = FullyConnectedPallas(num_in=4, num_out=3, hidden_layer_size=32,
                                 key=kp)

    out = model(x)
    out = jax.block_until_ready(out)

    ref = _reference(model, x)
    assert out.shape == (2, 3, 8, 8)
    err = float(jnp.max(jnp.abs(out.astype(jnp.float32) - ref.astype(jnp.float32))))
    assert err < 2e-2, err

    print("KERNEL_OK")
</pallas_src>

<mosaic_0001>
module attributes {stable_mosaic.version = 11 : i64} {
  func.func @_mlp_kernel(%arg0: i32, %arg1: memref<16x128xbf16, #tpu.memory_space<vmem>>, %arg2: memref<32x16xbf16, #tpu.memory_space<vmem>>, %arg3: memref<32x1xf32, #tpu.memory_space<vmem>>, %arg4: memref<32x32xbf16, #tpu.memory_space<vmem>>, %arg5: memref<32x1xf32, #tpu.memory_space<vmem>>, %arg6: memref<3x32xbf16, #tpu.memory_space<vmem>>, %arg7: memref<3x1xf32, #tpu.memory_space<vmem>>, %arg8: memref<3x128xbf16, #tpu.memory_space<vmem>>) attributes {dimension_semantics = [#tpu.dimension_semantics<parallel>], iteration_bounds = array<i64: 1>, scalar_prefetch = 0 : i64, scratch_operands = 0 : i64, tpu.core_type = #tpu.core_type<tc>, window_params = [{transform_indices = @transform_0, window_bounds = array<i64: 16, 128>}, {pipeline_mode = #tpu.pipeline_mode<synchronous>, transform_indices = @transform_1, window_bounds = array<i64: 32, 16>}, {pipeline_mode = #tpu.pipeline_mode<synchronous>, transform_indices = @transform_2, window_bounds = array<i64: 32, 1>}, {pipeline_mode = #tpu.pipeline_mode<synchronous>, transform_indices = @transform_3, window_bounds = array<i64: 32, 32>}, {pipeline_mode = #tpu.pipeline_mode<synchronous>, transform_indices = @transform_4, window_bounds = array<i64: 32, 1>}, {pipeline_mode = #tpu.pipeline_mode<synchronous>, transform_indices = @transform_5, window_bounds = array<i64: 3, 32>}, {pipeline_mode = #tpu.pipeline_mode<synchronous>, transform_indices = @transform_6, window_bounds = array<i64: 3, 1>}, {transform_indices = @transform_7, window_bounds = array<i64: 3, 128>}]} {
    %c0 = arith.constant 0 : index
    %c0_0 = arith.constant 0 : index
    %0 = vector.load %arg1[%c0, %c0_0] : memref<16x128xbf16, #tpu.memory_space<vmem>>, vector<16x128xbf16>
    %c0_1 = arith.constant 0 : index
    %c0_2 = arith.constant 0 : index
    %1 = vector.load %arg2[%c0_1, %c0_2] : memref<32x16xbf16, #tpu.memory_space<vmem>>, vector<32x16xbf16>
    %cst = arith.constant dense<0.000000e+00> : vector<32x128xf32>
    %2 = tpu.matmul %1, %0, %cst {dimension_numbers = #tpu.dot_dimension_numbers<[1], [0], [0], [1], [0, 0, 1, 1], [], []>} : vector<32x16xbf16>, vector<16x128xbf16>, vector<32x128xf32> -> vector<32x128xf32>
    %c0_3 = arith.constant 0 : index
    %c0_4 = arith.constant 0 : index
    %3 = vector.load %arg3[%c0_3, %c0_4] : memref<32x1xf32, #tpu.memory_space<vmem>>, vector<32x1xf32>
    %4 = vector.broadcast %3 : vector<32x1xf32> to vector<32x128xf32>
    %5 = arith.addf %2, %4 : vector<32x128xf32>
    %cst_5 = arith.constant 0.000000e+00 : f32
    %6 = vector.broadcast %cst_5 : f32 to vector<32x128xf32>
    %7 = arith.maximumf %5, %6 : vector<32x128xf32>
    %c0_6 = arith.constant 0 : index
    %c0_7 = arith.constant 0 : index
    %8 = vector.load %arg4[%c0_6, %c0_7] : memref<32x32xbf16, #tpu.memory_space<vmem>>, vector<32x32xbf16>
    %9 = arith.truncf %7 : vector<32x128xf32> to vector<32x128xbf16>
    %cst_8 = arith.constant dense<0.000000e+00> : vector<32x128xf32>
    %10 = tpu.matmul %8, %9, %cst_8 {dimension_numbers = #tpu.dot_dimension_numbers<[1], [0], [0], [1], [0, 0, 1, 1], [], []>} : vector<32x32xbf16>, vector<32x128xbf16>, vector<32x128xf32> -> vector<32x128xf32>
    %c0_9 = arith.constant 0 : index
    %c0_10 = arith.constant 0 : index
    %11 = vector.load %arg5[%c0_9, %c0_10] : memref<32x1xf32, #tpu.memory_space<vmem>>, vector<32x1xf32>
    %12 = vector.broadcast %11 : vector<32x1xf32> to vector<32x128xf32>
    %13 = arith.addf %10, %12 : vector<32x128xf32>
    %cst_11 = arith.constant 0.000000e+00 : f32
    %14 = vector.broadcast %cst_11 : f32 to vector<32x128xf32>
    %15 = arith.maximumf %13, %14 : vector<32x128xf32>
    %c0_12 = arith.constant 0 : index
    %c0_13 = arith.constant 0 : index
    %16 = vector.load %arg6[%c0_12, %c0_13] : memref<3x32xbf16, #tpu.memory_space<vmem>>, vector<3x32xbf16>
    %17 = arith.truncf %15 : vector<32x128xf32> to vector<32x128xbf16>
    %cst_14 = arith.constant dense<0.000000e+00> : vector<3x128xf32>
    %18 = tpu.matmul %16, %17, %cst_14 {dimension_numbers = #tpu.dot_dimension_numbers<[1], [0], [0], [1], [0, 0, 1, 1], [], []>} : vector<3x32xbf16>, vector<32x128xbf16>, vector<3x128xf32> -> vector<3x128xf32>
    %c0_15 = arith.constant 0 : index
    %c0_16 = arith.constant 0 : index
    %19 = vector.load %arg7[%c0_15, %c0_16] : memref<3x1xf32, #tpu.memory_space<vmem>>, vector<3x1xf32>
    %20 = vector.broadcast %19 : vector<3x1xf32> to vector<3x128xf32>
    %21 = arith.addf %18, %20 : vector<3x128xf32>
    %22 = arith.truncf %21 : vector<3x128xf32> to vector<3x128xbf16>
    %c0_17 = arith.constant 0 : index
    %c0_18 = arith.constant 0 : index
    %23 = vector.load %arg8[%c0_17, %c0_18] : memref<3x128xbf16, #tpu.memory_space<vmem>>, vector<3x128xbf16>
    tpu.vector_store %arg8[%c0_17, %c0_18], %22 {strides = array<i32>} : memref<3x128xbf16, #tpu.memory_space<vmem>>, vector<3x128xbf16>,
    return
  }
  func.func @transform_0(%arg0: i32) -> (i32, i32) {
    %c0_i32 = arith.constant 0 : i32
    %c0_i32_0 = arith.constant 0 : i32
    return %c0_i32, %arg0 : i32, i32
  }
  func.func @transform_1(%arg0: i32) -> (i32, i32) {
    %c0_i32 = arith.constant 0 : i32
    %c0_i32_0 = arith.constant 0 : i32
    %c0_i32_1 = arith.constant 0 : i32
    return %c0_i32, %c0_i32_0 : i32, i32
  }
  func.func @transform_2(%arg0: i32) -> (i32, i32) {
    %c0_i32 = arith.constant 0 : i32
    %c0_i32_0 = arith.constant 0 : i32
    %c0_i32_1 = arith.constant 0 : i32
    return %c0_i32, %c0_i32_0 : i32, i32
  }
  func.func @transform_3(%arg0: i32) -> (i32, i32) {
    %c0_i32 = arith.constant 0 : i32
    %c0_i32_0 = arith.constant 0 : i32
    %c0_i32_1 = arith.constant 0 : i32
    return %c0_i32, %c0_i32_0 : i32, i32
  }
  func.func @transform_4(%arg0: i32) -> (i32, i32) {
    %c0_i32 = arith.constant 0 : i32
    %c0_i32_0 = arith.constant 0 : i32
    %c0_i32_1 = arith.constant 0 : i32
    return %c0_i32, %c0_i32_0 : i32, i32
  }
  func.func @transform_5(%arg0: i32) -> (i32, i32) {
    %c0_i32 = arith.constant 0 : i32
    %c0_i32_0 = arith.constant 0 : i32
    %c0_i32_1 = arith.constant 0 : i32
    return %c0_i32, %c0_i32_0 : i32, i32
  }
  func.func @transform_6(%arg0: i32) -> (i32, i32) {
    %c0_i32 = arith.constant 0 : i32
    %c0_i32_0 = arith.constant 0 : i32
    %c0_i32_1 = arith.constant 0 : i32
    return %c0_i32, %c0_i32_0 : i32, i32
  }
  func.func @transform_7(%arg0: i32) -> (i32, i32) {
    %c0_i32 = arith.constant 0 : i32
    %c0_i32_0 = arith.constant 0 : i32
    return %c0_i32, %arg0 : i32, i32
  }
}

</mosaic_0001>

<bundles_post_ra>
// kernel: tpu_custom_call.1
= control target key start
LH: loop header
LB: loop body
LE: loop exit
PB: predicated region body
PF: predicated region fallthrough
CT: control target
= control target key end

     0   :  { %v285_v3 = vmov 0   ;;  %vm74_vm0 = vcmask 130048   ;;  %s378_s0 = inlined_call_operand.vmem [shape: bf16[16,128], index: 0, kind: input, shape index: {}]   ;;  %s379_s1 = inlined_call_operand.vmem [shape: bf16[32,16], index: 1, kind: input, shape index: {}]   ;;  %s380_s2 = inlined_call_operand.vmem [shape: f32[32,1], index: 2, kind: input, shape index: {}]   ;;  %s381_s3 = inlined_call_operand.vmem [shape: bf16[32,32], index: 3, kind: input, shape index: {}]   ;;  %s382_s4 = inlined_call_operand.vmem [shape: f32[32,1], index: 4, kind: input, shape index: {}]   ;;  %s383_s5 = inlined_call_operand.vmem [shape: bf16[3,32], index: 5, kind: input, shape index: {}]   ;;  %s384_s6 = inlined_call_operand.vmem [shape: f32[3,1], index: 6, kind: input, shape index: {}]   ;;  %s385_s7 = inlined_call_operand.hbm [shape: bf16[3,128], index: 7, kind: output, shape index: {}]  }
   0x1   :  { %v247_v0 = vld [vmem:[%s378_s0] sm:$0xff]  ;;  %v36_v1 = vld [vmem:[%s380_s2 + $0x10] sm:$0xff]  ;;  %257 = vset.pattern.permute.xlu1 %v285_v3  ;;  %256 = vset.pattern.permute.xlu0 %v285_v3 }
   0x2   :  { %v248_v2 = vld [vmem:[%s379_s1] sm:$0xff]  ;;  %88 = vmatpush.bf16.msra.mxu0 %v247_v0  ;;  %50 = vperm.xlu0 %256, %v36_v1  }
   0x3   :  { %v34_v4 = vld [vmem:[%s380_s2] sm:$0xff]  ;;  %258 = vset.pattern.permute.xlu2 %v285_v3 }
   0x4   :  { %40 = vperm.xlu1 %257, %v34_v4  }
   0x5   :  { %12 = vsyncpa [#allocation3], 0  ;;  %234 = vmatmul.msk.bf16.vlgmr.msra.gmra.mxu0 %vm74_vm0, %v248_v2  ;;  %v37_v5 = vld [vmem:[%s380_s2 + $0x18] sm:$0xff]  ;;  %v35_v6 = vld [vmem:[%s380_s2 + $0x8] sm:$0xff]  ;;  %vm144_vm1 = vcmask 261120   ;;  %vm200_vm2 = vcmask 1041408  }
   0x6   :  { %v110_v7 = vld [vmem:[%s382_s4] sm:$0xff]  ;;  %v111_v8 = vld [vmem:[%s382_s4 + $0x8] sm:$0xff]  ;;  %v112_v11 = vld [vmem:[%s382_s4 + $0x10] sm:$0xff]  ;;  %vm201_vm3 = vsmask.f32 1280  ;;  %s286_s25 = smov [#allocation2]  }
   0x7   :  { %v249_v9 = vld [vmem:[%s379_s1 + $0x8] sm:$0xff]  ;;  %126 = vperm.xlu2 %258, %v112_v11   ;;  %v113_v14 = vld [vmem:[%s382_s4 + $0x18] sm:$0xff]  ;;  %v177_v17 = vld [vmem:[%s384_s6] sm:$0x7]  ;;  %s211_s26 = sshll.u32 %s286_s25, 4  ;;  %s213_s29 = sshll.u32 %s385_s7, 4  ;;  %s212_s26 = int_to_ptr.vmem [resolvable:$true] %s211_s26  ;;  %s214_s29 = int_to_ptr.hbm [resolvable:$true] %s213_s29 }
   0x8   :  { %v250_v31 = vld [vmem:[%s381_s3] sm:$0xff]  ;;  %v251_v32 = vld [vmem:[%s381_s3 + $0x8] sm:$0xff]  ;;  %vm202_vm4 = vmand %vm200_vm2, %vm201_vm3 }
   0x9   :  { %v174_v51 = vld [vmem:[%s383_s5] sm:$0x3] }
   0xa   :  { %55 = vperm.xlu0 %256, %v37_v5   ;;  %v203_v55 = vld [vmem:[#allocation2] sm:$0x3] }
   0xc   :  { %45 = vperm.xlu1 %257, %v35_v6  }
   0xf   :  { %131 = vperm.xlu2 %258, %v113_v14  }
  0x12   :  { %116 = vperm.xlu0 %256, %v110_v7  }
  0x14   :  { %121 = vperm.xlu1 %257, %v111_v8  }
  0x15   :  { %235 = vmatmul.msk.bf16.gmra.mxu0 %vm74_vm0, %v249_v9 }
  0x17   :  { %180 = vperm.xlu2 %258, %v177_v17  }
  0x61   :  { %v127_v34 = vpop.permute.xlu2 %126 }
  0x69   :  { %v132_v39 = vpop.permute.xlu2 %131 }
  0x71   :  { %v181_v52 = vpop.permute.xlu2 %180 }
  0x74   :  { %v51_v15 = vpop.permute.xlu0 %50 }
  0x76   :  { %v41_v13 = vpop.permute.xlu1 %40 }
  0x7c   :  { %v56_v20 = vpop.permute.xlu0 %55 }
  0x7e   :  { %v46_v18 = vpop.permute.xlu1 %45 }
  0x82   :  { %v90_v10 = vpop.f32.mrf.mxu0 }
  0x83   :  { %v91_v24 = vadd.f32 %v90_v10, %v41_v13 }
  0x84   :  { %v117_v43 = vpop.permute.xlu0 %116 }
  0x85   :  { %v100_v29 = vmax.f32 %v91_v24, 0.0 }
  0x86   :  { %v122_v37 = vpop.permute.xlu1 %121 }
  0x8a   :  { %v92_v12 = vpop.f32.mrf.mxu0 }
  0x8b   :  { %v93_v22 = vadd.f32 %v92_v12, %v46_v18 }
  0x8d   :  { %v101_v27 = vmax.f32 %v93_v22, 0.0 }
  0x8f   :  { %v108_v30 = vpack.c.bf16 %v101_v27, %v100_v29 }
  0x92   :  { %v95_v16 = vpop.f32.mrf.mxu0 }
  0x93   :  { %v96_v19 = vadd.f32 %v95_v16, %v51_v15 }
  0x95   :  { %v102_v25 = vmax.f32 %v96_v19, 0.0 }
  0x9a   :  { %v97_v21 = vpop.f32.mrf.mxu0 }
  0x9b   :  { %v98_v23 = vadd.f32 %v97_v21, %v56_v20 }
  0x9d   :  { %v103_v26 = vmax.f32 %v98_v23, 0.0 }
  0x9f   :  { %v109_v28 = vpack.c.bf16 %v103_v26, %v102_v25 }
  0xa1   :  { %157 = vmatpush.bf16.msra.mxu1 %v109_v28  ;;  %252 = vmatpush.bf16.msra.mxu3 %v109_v28 }
  0xa5   :  { %158 = vmatpush.bf16.msra.mxu1 %v108_v30  ;;  %253 = vmatpush.bf16.msra.mxu3 %v108_v30 }
  0xa8   :  { %244 = vmatmul.msk.bf16.vlgmr.msra.gmra.mxu1 %vm144_vm1, %v250_v31  ;;  %245 = vmatmul.msk.bf16.vlgmr.msra.gmra.mxu3 %vm144_vm1, %v251_v32 }
 0x125   :  { %v160_v33 = vpop.f32.mrf.mxu1 }
 0x126   :  { %v161_v44 = vadd.f32 %v160_v33, %v117_v43 }
 0x128   :  { %v170_v49 = vmax.f32 %v161_v44, 0.0 }
 0x12b   :  { %v165_v35 = vpop.f32.mrf.mxu3 }
 0x12c   :  { %v166_v38 = vadd.f32 %v165_v35, %v127_v34 }
 0x12d   :  { %v162_v36 = vpop.f32.mrf.mxu1 }
 0x12e   :  { %v163_v41 = vadd.f32 %v162_v36, %v122_v37  ;;  %v172_v45 = vmax.f32 %v166_v38, 0.0 }
 0x130   :  { %v171_v47 = vmax.f32 %v163_v41, 0.0 }
 0x132   :  { %v175_v50 = vpack.c.bf16 %v171_v47, %v170_v49 }
 0x133   :  { %v167_v40 = vpop.f32.mrf.mxu3 }
 0x134   :  { %v168_v42 = vadd.f32 %v167_v40, %v132_v39 }
 0x136   :  { %v173_v46 = vmax.f32 %v168_v42, 0.0 }
 0x138   :  { %v176_v48 = vpack.c.bf16 %v173_v46, %v172_v45 }
 0x13a   :  { %192 = vmatpush.bf16.msra.mxu2 %v176_v48 }
 0x13e   :  { %193 = vmatpush.bf16.msra.mxu2 %v175_v50 }
 0x141   :  { %246 = vmatmul.msk.bf16.vlgmr.msra.gmra.mxu2 %vm144_vm1, %v174_v51 }
 0x1c4   :  { %v195_v53 = vpop.f32.mrf.mxu2 }
 0x1c5   :  { %v196_v54 = vadd.f32 %v195_v53, %v181_v52 }
 0x1c7   :  { %v199_v56 = vpack.c.bf16 %v196_v54, %v196_v54 }
 0x1c9   :  { %v204_v57 = vsel %vm202_vm4, %v199_v56, %v203_v55 }
 0x1ca   :  { %205 = vst [vmem:[#allocation2] sm:$0x3] %v204_v57 }
 0x1cb   :  { %216 = dma.vmem_to_hbm [thread:$0]  %s212_s26, 32, %s214_s29, [#allocation3]  }
 0x1cc   :  { %v197_v58 = vpop.f32.mrf.mxu2 }
 0x1cd   :  { %283 = dma.done.wait [#allocation3], 32  }
 0x1ce   :  { %284 = vsyncadd [#allocation3], 4294967264 }
 0x1cf   :  { %221 = vsyncpa [#allocation3], 1 }

</bundles_post_ra>
